<compile_context>
chip_gen: v7x
topology: tpu7x:2x2x1
jax: 0.10.0
libtpu: 0.0.40
codegen_flags: <defaults>
</compile_context>

<pallas_src>
import functools

import jax
import jax.numpy as jnp
from jax import lax
from jax.experimental import pallas as pl
from jax.experimental.pallas import tpu as pltpu


_STATIC_UNROLL_MAX = 16   # chunks up to this length are fully statically unrolled
_FORI_UNROLL = 8          # partial-unroll factor for longer chunks


def _lstm_cell_step(xg, h, c, whh, hidden_size):
    """One LSTM cell step.

    xg : (B, 4H) gate pre-activations (input projection + biases), any float dtype
    h,c: (B, H)  carried state, f32
    whh: (H, 4H) recurrent weights W_hh^T (f32 or bf16)
    """
    H = hidden_size
    gates = xg.astype(jnp.float32) + jnp.dot(
        h.astype(whh.dtype), whh, preferred_element_type=jnp.float32)   # (B, 4H) f32
    # TODO(synk): if H is not a multiple of 128 these slices cut inside a lane
    # group (per-step XLU relayout); pad H to 128-multiples for large models.
    i_g = jax.nn.sigmoid(gates[:, 0 * H:1 * H])
    f_g = jax.nn.sigmoid(gates[:, 1 * H:2 * H])
    g_g = jnp.tanh(gates[:, 2 * H:3 * H])
    o_g = jax.nn.sigmoid(gates[:, 3 * H:4 * H])
    c_new = f_g * c + i_g * g_g
    h_new = o_g * jnp.tanh(c_new)
    return h_new, c_new


def _lstm_recurrence_kernel(xg_ref, whh_ref, out_ref, cN_ref,
                            h_scr, c_scr, *, hidden_size, chunk):
    """One grid step == one (batch block, time chunk); serial inside.

    xg_ref : (chunk, Bblk, 4H) precomputed gate pre-activations (streamed)
    whh_ref: (H, 4H)           W_hh^T, whole-array resident in VMEM (single copy)
    out_ref: (chunk, Bblk, H)  time-major hidden outputs for this chunk
    cN_ref : (Bblk, H)         final cell state (written on last time chunk)
    h_scr/c_scr: (Bblk, H) f32 recurrent state carried across time chunks
    """
    H = hidden_size
    t_id = pl.program_id(1)

    @pl.when(t_id == 0)
    def _():
        h_scr[...] = jnp.zeros_like(h_scr)
        c_scr[...] = jnp.zeros_like(c_scr)

    h = h_scr[...]
    c = c_scr[...]

    if chunk <= _STATIC_UNROLL_MAX:
        # Short chunk: fully static unroll (all indices static).
        for t in range(chunk):
            h, c = _lstm_cell_step(xg_ref[t], h, c, whh_ref[...], H)
            out_ref[t] = h.astype(out_ref.dtype)        # dense (Bblk, H) store
    else:
        # Long chunk: bounded live ranges via fori_loop with moderate unroll.
        def body(t, carry):
            h_t, c_t = carry
            h_t, c_t = _lstm_cell_step(xg_ref[t], h_t, c_t, whh_ref[...], H)
            out_ref[t] = h_t.astype(out_ref.dtype)      # dense (Bblk, H) store
            return h_t, c_t

        h, c = lax.fori_loop(0, chunk, body, (h, c), unroll=_FORI_UNROLL)

    h_scr[...] = h
    c_scr[...] = c

    @pl.when(t_id == pl.num_programs(1) - 1)
    def _():
        cN_ref[...] = c.astype(cN_ref.dtype)


def lstm_recurrence_pallas(x_gates, whh_t, *, time_chunk=None, batch_block=None):
    """x_gates: (T, B, 4H) gate pre-activations (input proj + bias already applied).
    whh_t: (H, 4H).  Returns (outputs_time_major (T,B,H) f32, cN (B,H) f32)."""
    T, B, G = x_gates.shape
    H = whh_t.shape[0]
    assert G == 4 * H

    TC = T if time_chunk is None else time_chunk
    assert T % TC == 0, "T must be divisible by time_chunk"
    BB = B if batch_block is None else batch_block
    assert B % BB == 0, "B must be divisible by batch_block"

    kernel = functools.partial(_lstm_recurrence_kernel, hidden_size=H, chunk=TC)

    # VMEM budget: double-buffered pre-gate / output / cN blocks + resident
    # single-buffered weight + carried state; clamped to a sane scoped limit.
    needed = (2 * (TC * BB * 4 * H * x_gates.dtype.itemsize)   # pre-gates (pipelined)
              + 2 * (TC * BB * H * 4)                          # outputs (pipelined)
              + 2 * (BB * H * 4)                               # cN (pipelined)
              + H * 4 * H * whh_t.dtype.itemsize               # W_hh^T (resident)
              + 2 * (BB * H * 4))                              # h/c scratch
    vmem_limit = int(min(96 * 2 ** 20, max(32 * 2 ** 20, 2 * needed)))

    outputs_tm, cN = pl.pallas_call(
        kernel,
        out_shape=(
            jax.ShapeDtypeStruct((T, B, H), jnp.float32),      # time-major hidden states
            jax.ShapeDtypeStruct((B, H), jnp.float32),         # final cell state
        ),
        grid_spec=pltpu.PrefetchScalarGridSpec(
            num_scalar_prefetch=0,
            grid=(B // BB, T // TC),   # (parallel batch blocks, serial time chunks)
            in_specs=[
                pl.BlockSpec((TC, BB, 4 * H), lambda b, i: (i, b, 0)),    # pre-gates chunk
                pl.BlockSpec(memory_space=pltpu.MemorySpace.VMEM),        # W_hh^T, single copy
            ],
            out_specs=[
                pl.BlockSpec((TC, BB, H), lambda b, i: (i, b, 0)),        # outputs chunk (dense)
                pl.BlockSpec((BB, H), lambda b, i: (b, 0)),               # final cell (resident)
            ],
            scratch_shapes=[
                pltpu.VMEM((BB, H), jnp.float32),                         # h state
                pltpu.VMEM((BB, H), jnp.float32),                         # c state
            ],
        ),
        compiler_params=pltpu.CompilerParams(
            dimension_semantics=("parallel", "arbitrary"),   # batch parallel, time serial
            vmem_limit_bytes=vmem_limit,
        ),
    )(x_gates, whh_t)

    return outputs_tm, cN


def encoder_forward(tokens, emb_table, w_ih, w_hh, b_ih, b_hh, *,
                    compute_dtype=jnp.float32, time_chunk=None, batch_block=None):
    """tokens: (B, T) int32.  Returns (outputs (B,T,H), hidden (1,B,H), cell (1,B,H))."""
    B, T = tokens.shape
    H = w_hh.shape[1]

    # Embedding gather, directly time-major (only the tiny int token matrix is
    # transposed, never the activations).
    x_tbe = jnp.take(emb_table, tokens.T, axis=0)            # (T, B, E)

    # Hoisted input projection: ONE batched MXU matmul for all timesteps,
    # bias (b_ih + b_hh) fused in.  Computed in f32, then cast for streaming.
    wih_t = jnp.transpose(w_ih)                              # (E, 4H)
    bias = b_ih + b_hh                                       # (4H,)
    x_gates = (x_tbe.reshape(T * B, -1) @ wih_t).reshape(T, B, 4 * H) + bias
    x_gates = x_gates.astype(compute_dtype)                  # bf16 halves streamed DMA
    whh_t = jnp.transpose(w_hh).astype(compute_dtype)        # (H, 4H)

    out_tm, cN = lstm_recurrence_pallas(
        x_gates, whh_t, time_chunk=time_chunk, batch_block=batch_block)

    outputs = jnp.transpose(out_tm, (1, 0, 2))               # (B, T, H) batch_first, once
    hidden = out_tm[-1][None, :, :]                          # (1, B, H) == final h
    cell = cN[None, :, :]                                    # (1, B, H)
    return outputs, hidden, cell


def _reference_forward(tokens, emb_table, w_ih, w_hh, b_ih, b_hh):
    """Pure-JAX f32 LSTM reference (PyTorch gate order i,f,g,o) for validation."""
    embedded = jnp.take(emb_table, tokens, axis=0)           # (B, T, E)
    x_tbe = jnp.transpose(embedded, (1, 0, 2))               # (T, B, E)
    B = x_tbe.shape[1]
    H = w_hh.shape[1]

    def step(carry, x_t):
        h, c = carry
        gates = x_t @ w_ih.T + b_ih + h @ w_hh.T + b_hh
        i = jax.nn.sigmoid(gates[:, 0 * H:1 * H])
        f = jax.nn.sigmoid(gates[:, 1 * H:2 * H])
        g = jnp.tanh(gates[:, 2 * H:3 * H])
        o = jax.nn.sigmoid(gates[:, 3 * H:4 * H])
        c = f * c + i * g
        h = o * jnp.tanh(c)
        return (h, c), h

    init = (jnp.zeros((B, H), jnp.float32), jnp.zeros((B, H), jnp.float32))
    (hN, cN), outs = lax.scan(step, init, x_tbe)
    return jnp.transpose(outs, (1, 0, 2)), hN[None], cN[None]


if __name__ == "__main__":
    vocab_size, embed_size, hidden_size = 32, 16, 32
    batch, seq = 2, 8

    key = jax.random.PRNGKey(0)
    k_emb, k_wih, k_whh, k_bih, k_bhh, k_tok, k_tok2 = jax.random.split(key, 7)

    # Deterministic synthetic "parameters" (not a checkpoint).
    emb_table = jax.random.normal(k_emb, (vocab_size, embed_size), jnp.float32) * 0.1
    emb_table = emb_table.at[0].set(0.0)      # padding_idx=0 -> zero embedding row
    w_ih = jax.random.normal(k_wih, (4 * hidden_size, embed_size), jnp.float32) * 0.1
    w_hh = jax.random.normal(k_whh, (4 * hidden_size, hidden_size), jnp.float32) * 0.1
    b_ih = jax.random.normal(k_bih, (4 * hidden_size,), jnp.float32) * 0.1
    b_hh = jax.random.normal(k_bhh, (4 * hidden_size,), jnp.float32) * 0.1

    # --- run 1: f32 path, single time chunk (static unroll), tight tolerance ---
    tokens = jax.random.randint(k_tok, (batch, seq), 0, vocab_size, jnp.int32)
    fwd_f32 = jax.jit(functools.partial(encoder_forward, compute_dtype=jnp.float32))
    outputs, hidden, cell = jax.block_until_ready(
        fwd_f32(tokens, emb_table, w_ih, w_hh, b_ih, b_hh))

    ref_out, ref_h, ref_c = _reference_forward(tokens, emb_table, w_ih, w_hh, b_ih, b_hh)
    assert outputs.shape == (batch, seq, hidden_size)
    assert hidden.shape == (1, batch, hidden_size)
    assert cell.shape == (1, batch, hidden_size)
    assert jnp.allclose(outputs, ref_out, rtol=1e-4, atol=1e-4)
    assert jnp.allclose(hidden, ref_h, rtol=1e-4, atol=1e-4)
    assert jnp.allclose(cell, ref_c, rtol=1e-4, atol=1e-4)

    # --- run 2: bf16-streamed path, chunked time (fori_loop recurrence), loose tol ---
    seq2, chunk2 = 64, 32
    tokens2 = jax.random.randint(k_tok2, (batch, seq2), 0, vocab_size, jnp.int32)
    fwd_bf16 = jax.jit(functools.partial(
        encoder_forward, compute_dtype=jnp.bfloat16, time_chunk=chunk2))
    outputs2, hidden2, cell2 = jax.block_until_ready(
        fwd_bf16(tokens2, emb_table, w_ih, w_hh, b_ih, b_hh))

    ref_out2, ref_h2, ref_c2 = _reference_forward(tokens2, emb_table, w_ih, w_hh, b_ih, b_hh)
    assert outputs2.shape == (batch, seq2, hidden_size)
    assert jnp.allclose(outputs2, ref_out2, rtol=3e-2, atol=3e-2)
    assert jnp.allclose(hidden2, ref_h2, rtol=3e-2, atol=3e-2)
    assert jnp.allclose(cell2, ref_c2, rtol=3e-2, atol=3e-2)

    print("KERNEL_OK")
</pallas_src>

<mosaic_0001>
module attributes {stable_mosaic.version = 11 : i64} {
  func.func @_lstm_recurrence_kernel(%arg0: i32, %arg1: i32, %arg2: memref<8x2x128xf32, #tpu.memory_space<vmem>>, %arg3: memref<32x128xf32, #tpu.memory_space<vmem>>, %arg4: memref<8x2x32xf32, #tpu.memory_space<vmem>>, %arg5: memref<2x32xf32, #tpu.memory_space<vmem>>, %arg6: memref<2x32xf32, #tpu.memory_space<vmem>>, %arg7: memref<2x32xf32, #tpu.memory_space<vmem>>) attributes {dimension_semantics = [#tpu.dimension_semantics<parallel>, #tpu.dimension_semantics<arbitrary>], iteration_bounds = array<i64: 1, 1>, scalar_prefetch = 0 : i64, scratch_operands = 2 : i64, tpu.core_type = #tpu.core_type<tc>, window_params = [{transform_indices = @transform_0, window_bounds = array<i64: 8, 2, 128>}, {pipeline_mode = #tpu.pipeline_mode<synchronous>, transform_indices = @transform_1, window_bounds = array<i64: 32, 128>}, {transform_indices = @transform_2, window_bounds = array<i64: 8, 2, 32>}, {transform_indices = @transform_3, window_bounds = array<i64: 2, 32>}]} {
    %c0_i32 = arith.constant 0 : i32
    %0 = arith.cmpi eq, %arg1, %c0_i32 : i32
    %1 = arith.extui %0 : i1 to i32
    %c0_i32_0 = arith.constant 0 : i32
    %2 = arith.cmpi ne, %1, %c0_i32_0 : i32
    scf.if %2 {
      %cst_98 = arith.constant 0.000000e+00 : f32
      %274 = vector.broadcast %cst_98 : f32 to vector<2x32xf32>
      %c0_99 = arith.constant 0 : index
      %c0_100 = arith.constant 0 : index
      %275 = vector.load %arg6[%c0_99, %c0_100] : memref<2x32xf32, #tpu.memory_space<vmem>>, vector<2x32xf32>
      tpu.vector_store %arg6[%c0_99, %c0_100], %274 {strides = array<i32>} : memref<2x32xf32, #tpu.memory_space<vmem>>, vector<2x32xf32>,
      %cst_101 = arith.constant 0.000000e+00 : f32
      %276 = vector.broadcast %cst_101 : f32 to vector<2x32xf32>
      %c0_102 = arith.constant 0 : index
      %c0_103 = arith.constant 0 : index
      %277 = vector.load %arg7[%c0_102, %c0_103] : memref<2x32xf32, #tpu.memory_space<vmem>>, vector<2x32xf32>
      tpu.vector_store %arg7[%c0_102, %c0_103], %276 {strides = array<i32>} : memref<2x32xf32, #tpu.memory_space<vmem>>, vector<2x32xf32>,
    } else {
    }
    %c0 = arith.constant 0 : index
    %c0_1 = arith.constant 0 : index
    %3 = vector.load %arg6[%c0, %c0_1] : memref<2x32xf32, #tpu.memory_space<vmem>>, vector<2x32xf32>
    %c0_2 = arith.constant 0 : index
    %c0_3 = arith.constant 0 : index
    %4 = vector.load %arg7[%c0_2, %c0_3] : memref<2x32xf32, #tpu.memory_space<vmem>>, vector<2x32xf32>
    %c0_4 = arith.constant 0 : index
    %c0_5 = arith.constant 0 : index
    %c0_6 = arith.constant 0 : index
    %5 = vector.load %arg2[%c0_4, %c0_5, %c0_6] : memref<8x2x128xf32, #tpu.memory_space<vmem>>, vector<1x2x128xf32>
    %6 = vector.shape_cast %5 : vector<1x2x128xf32> to vector<2x128xf32>
    %c0_7 = arith.constant 0 : index
    %c0_8 = arith.constant 0 : index
    %7 = vector.load %arg3[%c0_7, %c0_8] : memref<32x128xf32, #tpu.memory_space<vmem>>, vector<32x128xf32>
    %cst = arith.constant dense<0.000000e+00> : vector<2x128xf32>
    %8 = tpu.matmul %3, %7, %cst {dimension_numbers = #tpu.dot_dimension_numbers<[1], [0], [0], [1], [0, 0, 1, 1], [], []>} : vector<2x32xf32>, vector<32x128xf32>, vector<2x128xf32> -> vector<2x128xf32>
    %9 = arith.addf %6, %8 : vector<2x128xf32>
    %10 = vector.extract_strided_slice %9 {offsets = [0, 0], sizes = [2, 32], strides = [1, 1]} : vector<2x128xf32> to vector<2x32xf32>
    %11 = arith.negf %10 : vector<2x32xf32>
    %12 = math.exp %11 : vector<2x32xf32>
    %cst_9 = arith.constant 1.000000e+00 : f32
    %13 = vector.broadcast %cst_9 : f32 to vector<2x32xf32>
    %14 = arith.addf %13, %12 : vector<2x32xf32>
    %15 = arith.divf %13, %14 : vector<2x32xf32>
    %16 = vector.extract_strided_slice %9 {offsets = [0, 32], sizes = [2, 32], strides = [1, 1]} : vector<2x128xf32> to vector<2x32xf32>
    %17 = arith.negf %16 : vector<2x32xf32>
    %18 = math.exp %17 : vector<2x32xf32>
    %cst_10 = arith.constant 1.000000e+00 : f32
    %19 = vector.broadcast %cst_10 : f32 to vector<2x32xf32>
    %20 = arith.addf %19, %18 : vector<2x32xf32>
    %21 = arith.divf %19, %20 : vector<2x32xf32>
    %22 = vector.extract_strided_slice %9 {offsets = [0, 64], sizes = [2, 32], strides = [1, 1]} : vector<2x128xf32> to vector<2x32xf32>
    %23 = math.tanh %22 : vector<2x32xf32>
    %24 = vector.extract_strided_slice %9 {offsets = [0, 96], sizes = [2, 32], strides = [1, 1]} : vector<2x128xf32> to vector<2x32xf32>
    %25 = arith.negf %24 : vector<2x32xf32>
    %26 = math.exp %25 : vector<2x32xf32>
    %cst_11 = arith.constant 1.000000e+00 : f32
    %27 = vector.broadcast %cst_11 : f32 to vector<2x32xf32>
    %28 = arith.addf %27, %26 : vector<2x32xf32>
    %29 = arith.divf %27, %28 : vector<2x32xf32>
    %30 = arith.mulf %21, %4 : vector<2x32xf32>
    %31 = arith.mulf %15, %23 : vector<2x32xf32>
    %32 = arith.addf %30, %31 : vector<2x32xf32>
    %33 = math.tanh %32 : vector<2x32xf32>
    %34 = arith.mulf %29, %33 : vector<2x32xf32>
    %c0_12 = arith.constant 0 : index
    %c0_13 = arith.constant 0 : index
    %c0_14 = arith.constant 0 : index
    %35 = vector.load %arg4[%c0_12, %c0_13, %c0_14] : memref<8x2x32xf32, #tpu.memory_space<vmem>>, vector<1x2x32xf32>
    %36 = vector.shape_cast %35 : vector<1x2x32xf32> to vector<2x32xf32>
    %37 = vector.shape_cast %34 : vector<2x32xf32> to vector<1x2x32xf32>
    tpu.vector_store %arg4[%c0_12, %c0_13, %c0_14], %37 {strides = array<i32>} : memref<8x2x32xf32, #tpu.memory_space<vmem>>, vector<1x2x32xf32>,
    %c1 = arith.constant 1 : index
    %c0_15 = arith.constant 0 : index
    %c0_16 = arith.constant 0 : index
    %38 = vector.load %arg2[%c1, %c0_15, %c0_16] : memref<8x2x128xf32, #tpu.memory_space<vmem>>, vector<1x2x128xf32>
    %39 = vector.shape_cast %38 : vector<1x2x128xf32> to vector<2x128xf32>
    %c0_17 = arith.constant 0 : index
    %c0_18 = arith.constant 0 : index
    %40 = vector.load %arg3[%c0_17, %c0_18] : memref<32x128xf32, #tpu.memory_space<vmem>>, vector<32x128xf32>
    %cst_19 = arith.constant dense<0.000000e+00> : vector<2x128xf32>
    %41 = tpu.matmul %34, %40, %cst_19 {dimension_numbers = #tpu.dot_dimension_numbers<[1], [0], [0], [1], [0, 0, 1, 1], [], []>} : vector<2x32xf32>, vector<32x128xf32>, vector<2x128xf32> -> vector<2x128xf32>
    %42 = arith.addf %39, %41 : vector<2x128xf32>
    %43 = vector.extract_strided_slice %42 {offsets = [0, 0], sizes = [2, 32], strides = [1, 1]} : vector<2x128xf32> to vector<2x32xf32>
    %44 = arith.negf %43 : vector<2x32xf32>
    %45 = math.exp %44 : vector<2x32xf32>
    %cst_20 = arith.constant 1.000000e+00 : f32
    %46 = vector.broadcast %cst_20 : f32 to vector<2x32xf32>
    %47 = arith.addf %46, %45 : vector<2x32xf32>
    %48 = arith.divf %46, %47 : vector<2x32xf32>
    %49 = vector.extract_strided_slice %42 {offsets = [0, 32], sizes = [2, 32], strides = [1, 1]} : vector<2x128xf32> to vector<2x32xf32>
    %50 = arith.negf %49 : vector<2x32xf32>
    %51 = math.exp %50 : vector<2x32xf32>
    %cst_21 = arith.constant 1.000000e+00 : f32
    %52 = vector.broadcast %cst_21 : f32 to vector<2x32xf32>
    %53 = arith.addf %52, %51 : vector<2x32xf32>
    %54 = arith.divf %52, %53 : vector<2x32xf32>
    %55 = vector.extract_strided_slice %42 {offsets = [0, 64], sizes = [2, 32], strides = [1, 1]} : vector<2x128xf32> to vector<2x32xf32>
    %56 = math.tanh %55 : vector<2x32xf32>
    %57 = vector.extract_strided_slice %42 {offsets = [0, 96], sizes = [2, 32], strides = [1, 1]} : vector<2x128xf32> to vector<2x32xf32>
    %58 = arith.negf %57 : vector<2x32xf32>
    %59 = math.exp %58 : vector<2x32xf32>
    %cst_22 = arith.constant 1.000000e+00 : f32
    %60 = vector.broadcast %cst_22 : f32 to vector<2x32xf32>
    %61 = arith.addf %60, %59 : vector<2x32xf32>
    %62 = arith.divf %60, %61 : vector<2x32xf32>
    %63 = arith.mulf %54, %32 : vector<2x32xf32>
    %64 = arith.mulf %48, %56 : vector<2x32xf32>
    %65 = arith.addf %63, %64 : vector<2x32xf32>
    %66 = math.tanh %65 : vector<2x32xf32>
    %67 = arith.mulf %62, %66 : vector<2x32xf32>
    %c1_23 = arith.constant 1 : index
    %c0_24 = arith.constant 0 : index
    %c0_25 = arith.constant 0 : index
    %68 = vector.load %arg4[%c1_23, %c0_24, %c0_25] : memref<8x2x32xf32, #tpu.memory_space<vmem>>, vector<1x2x32xf32>
    %69 = vector.shape_cast %68 : vector<1x2x32xf32> to vector<2x32xf32>
    %70 = vector.shape_cast %67 : vector<2x32xf32> to vector<1x2x32xf32>
    tpu.vector_store %arg4[%c1_23, %c0_24, %c0_25], %70 {strides = array<i32>} : memref<8x2x32xf32, #tpu.memory_space<vmem>>, vector<1x2x32xf32>,
    %c2 = arith.constant 2 : index
    %c0_26 = arith.constant 0 : index
    %c0_27 = arith.constant 0 : index
    %71 = vector.load %arg2[%c2, %c0_26, %c0_27] : memref<8x2x128xf32, #tpu.memory_space<vmem>>, vector<1x2x128xf32>
    %72 = vector.shape_cast %71 : vector<1x2x128xf32> to vector<2x128xf32>
    %c0_28 = arith.constant 0 : index
    %c0_29 = arith.constant 0 : index
    %73 = vector.load %arg3[%c0_28, %c0_29] : memref<32x128xf32, #tpu.memory_space<vmem>>, vector<32x128xf32>
    %cst_30 = arith.constant dense<0.000000e+00> : vector<2x128xf32>
    %74 = tpu.matmul %67, %73, %cst_30 {dimension_numbers = #tpu.dot_dimension_numbers<[1], [0], [0], [1], [0, 0, 1, 1], [], []>} : vector<2x32xf32>, vector<32x128xf32>, vector<2x128xf32> -> vector<2x128xf32>
    %75 = arith.addf %72, %74 : vector<2x128xf32>
    %76 = vector.extract_strided_slice %75 {offsets = [0, 0], sizes = [2, 32], strides = [1, 1]} : vector<2x128xf32> to vector<2x32xf32>
    %77 = arith.negf %76 : vector<2x32xf32>
    %78 = math.exp %77 : vector<2x32xf32>
    %cst_31 = arith.constant 1.000000e+00 : f32
    %79 = vector.broadcast %cst_31 : f32 to vector<2x32xf32>
    %80 = arith.addf %79, %78 : vector<2x32xf32>
    %81 = arith.divf %79, %80 : vector<2x32xf32>
    %82 = vector.extract_strided_slice %75 {offsets = [0, 32], sizes = [2, 32], strides = [1, 1]} : vector<2x128xf32> to vector<2x32xf32>
    %83 = arith.negf %82 : vector<2x32xf32>
    %84 = math.exp %83 : vector<2x32xf32>
    %cst_32 = arith.constant 1.000000e+00 : f32
    %85 = vector.broadcast %cst_32 : f32 to vector<2x32xf32>
    %86 = arith.addf %85, %84 : vector<2x32xf32>
    %87 = arith.divf %85, %86 : vector<2x32xf32>
    %88 = vector.extract_strided_slice %75 {offsets = [0, 64], sizes = [2, 32], strides = [1, 1]} : vector<2x128xf32> to vector<2x32xf32>
    %89 = math.tanh %88 : vector<2x32xf32>
    %90 = vector.extract_strided_slice %75 {offsets = [0, 96], sizes = [2, 32], strides = [1, 1]} : vector<2x128xf32> to vector<2x32xf32>
    %91 = arith.negf %90 : vector<2x32xf32>
    %92 = math.exp %91 : vector<2x32xf32>
    %cst_33 = arith.constant 1.000000e+00 : f32
    %93 = vector.broadcast %cst_33 : f32 to vector<2x32xf32>
    %94 = arith.addf %93, %92 : vector<2x32xf32>
    %95 = arith.divf %93, %94 : vector<2x32xf32>
    %96 = arith.mulf %87, %65 : vector<2x32xf32>
    %97 = arith.mulf %81, %89 : vector<2x32xf32>
    %98 = arith.addf %96, %97 : vector<2x32xf32>
    %99 = math.tanh %98 : vector<2x32xf32>
    %100 = arith.mulf %95, %99 : vector<2x32xf32>
    %c2_34 = arith.constant 2 : index
    %c0_35 = arith.constant 0 : index
    %c0_36 = arith.constant 0 : index
    %101 = vector.load %arg4[%c2_34, %c0_35, %c0_36] : memref<8x2x32xf32, #tpu.memory_space<vmem>>, vector<1x2x32xf32>
    %102 = vector.shape_cast %101 : vector<1x2x32xf32> to vector<2x32xf32>
    %103 = vector.shape_cast %100 : vector<2x32xf32> to vector<1x2x32xf32>
    tpu.vector_store %arg4[%c2_34, %c0_35, %c0_36], %103 {strides = array<i32>} : memref<8x2x32xf32, #tpu.memory_space<vmem>>, vector<1x2x32xf32>,
    %c3 = arith.constant 3 : index
    %c0_37 = arith.constant 0 : index
    %c0_38 = arith.constant 0 : index
    %104 = vector.load %arg2[%c3, %c0_37, %c0_38] : memref<8x2x128xf32, #tpu.memory_space<vmem>>, vector<1x2x128xf32>
    %105 = vector.shape_cast %104 : vector<1x2x128xf32> to vector<2x128xf32>
    %c0_39 = arith.constant 0 : index
    %c0_40 = arith.constant 0 : index
    %106 = vector.load %arg3[%c0_39, %c0_40] : memref<32x128xf32, #tpu.memory_space<vmem>>, vector<32x128xf32>
    %cst_41 = arith.constant dense<0.000000e+00> : vector<2x128xf32>
    %107 = tpu.matmul %100, %106, %cst_41 {dimension_numbers = #tpu.dot_dimension_numbers<[1], [0], [0], [1], [0, 0, 1, 1], [], []>} : vector<2x32xf32>, vector<32x128xf32>, vector<2x128xf32> -> vector<2x128xf32>
    %108 = arith.addf %105, %107 : vector<2x128xf32>
    %109 = vector.extract_strided_slice %108 {offsets = [0, 0], sizes = [2, 32], strides = [1, 1]} : vector<2x128xf32> to vector<2x32xf32>
    %110 = arith.negf %109 : vector<2x32xf32>
    %111 = math.exp %110 : vector<2x32xf32>
    %cst_42 = arith.constant 1.000000e+00 : f32
    %112 = vector.broadcast %cst_42 : f32 to vector<2x32xf32>
    %113 = arith.addf %112, %111 : vector<2x32xf32>
    %114 = arith.divf %112, %113 : vector<2x32xf32>
    %115 = vector.extract_strided_slice %108 {offsets = [0, 32], sizes = [2, 32], strides = [1, 1]} : vector<2x128xf32> to vector<2x32xf32>
    %116 = arith.negf %115 : vector<2x32xf32>
    %117 = math.exp %116 : vector<2x32xf32>
    %cst_43 = arith.constant 1.000000e+00 : f32
    %118 = vector.broadcast %cst_43 : f32 to vector<2x32xf32>
    %119 = arith.addf %118, %117 : vector<2x32xf32>
    %120 = arith.divf %118, %119 : vector<2x32xf32>
    %121 = vector.extract_strided_slice %108 {offsets = [0, 64], sizes = [2, 32], strides = [1, 1]} : vector<2x128xf32> to vector<2x32xf32>
    %122 = math.tanh %121 : vector<2x32xf32>
    %123 = vector.extract_strided_slice %108 {offsets = [0, 96], sizes = [2, 32], strides = [1, 1]} : vector<2x128xf32> to vector<2x32xf32>
    %124 = arith.negf %123 : vector<2x32xf32>
    %125 = math.exp %124 : vector<2x32xf32>
    %cst_44 = arith.constant 1.000000e+00 : f32
    %126 = vector.broadcast %cst_44 : f32 to vector<2x32xf32>
    %127 = arith.addf %126, %125 : vector<2x32xf32>
    %128 = arith.divf %126, %127 : vector<2x32xf32>
    %129 = arith.mulf %120, %98 : vector<2x32xf32>
    %130 = arith.mulf %114, %122 : vector<2x32xf32>
    %131 = arith.addf %129, %130 : vector<2x32xf32>
    %132 = math.tanh %131 : vector<2x32xf32>
    %133 = arith.mulf %128, %132 : vector<2x32xf32>
    %c3_45 = arith.constant 3 : index
    %c0_46 = arith.constant 0 : index
    %c0_47 = arith.constant 0 : index
    %134 = vector.load %arg4[%c3_45, %c0_46, %c0_47] : memref<8x2x32xf32, #tpu.memory_space<vmem>>, vector<1x2x32xf32>
    %135 = vector.shape_cast %134 : vector<1x2x32xf32> to vector<2x32xf32>
    %136 = vector.shape_cast %133 : vector<2x32xf32> to vector<1x2x32xf32>
    tpu.vector_store %arg4[%c3_45, %c0_46, %c0_47], %136 {strides = array<i32>} : memref<8x2x32xf32, #tpu.memory_space<vmem>>, vector<1x2x32xf32>,
    %c4 = arith.constant 4 : index
    %c0_48 = arith.constant 0 : index
    %c0_49 = arith.constant 0 : index
    %137 = vector.load %arg2[%c4, %c0_48, %c0_49] : memref<8x2x128xf32, #tpu.memory_space<vmem>>, vector<1x2x128xf32>
    %138 = vector.shape_cast %137 : vector<1x2x128xf32> to vector<2x128xf32>
    %c0_50 = arith.constant 0 : index
    %c0_51 = arith.constant 0 : index
    %139 = vector.load %arg3[%c0_50, %c0_51] : memref<32x128xf32, #tpu.memory_space<vmem>>, vector<32x128xf32>
    %cst_52 = arith.constant dense<0.000000e+00> : vector<2x128xf32>
    %140 = tpu.matmul %133, %139, %cst_52 {dimension_numbers = #tpu.dot_dimension_numbers<[1], [0], [0], [1], [0, 0, 1, 1], [], []>} : vector<2x32xf32>, vector<32x128xf32>, vector<2x128xf32> -> vector<2x128xf32>
    %141 = arith.addf %138, %140 : vector<2x128xf32>
    %142 = vector.extract_strided_slice %141 {offsets = [0, 0], sizes = [2, 32], strides = [1, 1]} : vector<2x128xf32> to vector<2x32xf32>
    %143 = arith.negf %142 : vector<2x32xf32>
    %144 = math.exp %143 : vector<2x32xf32>
    %cst_53 = arith.constant 1.000000e+00 : f32
    %145 = vector.broadcast %cst_53 : f32 to vector<2x32xf32>
    %146 = arith.addf %145, %144 : vector<2x32xf32>
    %147 = arith.divf %145, %146 : vector<2x32xf32>
    %148 = vector.extract_strided_slice %141 {offsets = [0, 32], sizes = [2, 32], strides = [1, 1]} : vector<2x128xf32> to vector<2x32xf32>
    %149 = arith.negf %148 : vector<2x32xf32>
    %150 = math.exp %149 : vector<2x32xf32>
    %cst_54 = arith.constant 1.000000e+00 : f32
    %151 = vector.broadcast %cst_54 : f32 to vector<2x32xf32>
    %152 = arith.addf %151, %150 : vector<2x32xf32>
    %153 = arith.divf %151, %152 : vector<2x32xf32>
    %154 = vector.extract_strided_slice %141 {offsets = [0, 64], sizes = [2, 32], strides = [1, 1]} : vector<2x128xf32> to vector<2x32xf32>
    %155 = math.tanh %154 : vector<2x32xf32>
    %156 = vector.extract_strided_slice %141 {offsets = [0, 96], sizes = [2, 32], strides = [1, 1]} : vector<2x128xf32> to vector<2x32xf32>
    %157 = arith.negf %156 : vector<2x32xf32>
    %158 = math.exp %157 : vector<2x32xf32>
    %cst_55 = arith.constant 1.000000e+00 : f32
    %159 = vector.broadcast %cst_55 : f32 to vector<2x32xf32>
    %160 = arith.addf %159, %158 : vector<2x32xf32>
    %161 = arith.divf %159, %160 : vector<2x32xf32>
    %162 = arith.mulf %153, %131 : vector<2x32xf32>
    %163 = arith.mulf %147, %155 : vector<2x32xf32>
    %164 = arith.addf %162, %163 : vector<2x32xf32>
    %165 = math.tanh %164 : vector<2x32xf32>
    %166 = arith.mulf %161, %165 : vector<2x32xf32>
    %c4_56 = arith.constant 4 : index
    %c0_57 = arith.constant 0 : index
    %c0_58 = arith.constant 0 : index
    %167 = vector.load %arg4[%c4_56, %c0_57, %c0_58] : memref<8x2x32xf32, #tpu.memory_space<vmem>>, vector<1x2x32xf32>
    %168 = vector.shape_cast %167 : vector<1x2x32xf32> to vector<2x32xf32>
    %169 = vector.shape_cast %166 : vector<2x32xf32> to vector<1x2x32xf32>
    tpu.vector_store %arg4[%c4_56, %c0_57, %c0_58], %169 {strides = array<i32>} : memref<8x2x32xf32, #tpu.memory_space<vmem>>, vector<1x2x32xf32>,
    %c5 = arith.constant 5 : index
    %c0_59 = arith.constant 0 : index
    %c0_60 = arith.constant 0 : index
    %170 = vector.load %arg2[%c5, %c0_59, %c0_60] : memref<8x2x128xf32, #tpu.memory_space<vmem>>, vector<1x2x128xf32>
    %171 = vector.shape_cast %170 : vector<1x2x128xf32> to vector<2x128xf32>
    %c0_61 = arith.constant 0 : index
    %c0_62 = arith.constant 0 : index
    %172 = vector.load %arg3[%c0_61, %c0_62] : memref<32x128xf32, #tpu.memory_space<vmem>>, vector<32x128xf32>
    %cst_63 = arith.constant dense<0.000000e+00> : vector<2x128xf32>
    %173 = tpu.matmul %166, %172, %cst_63 {dimension_numbers = #tpu.dot_dimension_numbers<[1], [0], [0], [1], [0, 0, 1, 1], [], []>} : vector<2x32xf32>, vector<32x128xf32>, vector<2x128xf32> -> vector<2x128xf32>
    %174 = arith.addf %171, %173 : vector<2x128xf32>
    %175 = vector.extract_strided_slice %174 {offsets = [0, 0], sizes = [2, 32], strides = [1, 1]} : vector<2x128xf32> to vector<2x32xf32>
    %176 = arith.negf %175 : vector<2x32xf32>
    %177 = math.exp %176 : vector<2x32xf32>
    %cst_64 = arith.constant 1.000000e+00 : f32
    %178 = vector.broadcast %cst_64 : f32 to vector<2x32xf32>
    %179 = arith.addf %178, %177 : vector<2x32xf32>
    %180 = arith.divf %178, %179 : vector<2x32xf32>
    %181 = vector.extract_strided_slice %174 {offsets = [0, 32], sizes = [2, 32], strides = [1, 1]} : vector<2x128xf32> to vector<2x32xf32>
    %182 = arith.negf %181 : vector<2x32xf32>
    %183 = math.exp %182 : vector<2x32xf32>
    %cst_65 = arith.constant 1.000000e+00 : f32
    %184 = vector.broadcast %cst_65 : f32 to vector<2x32xf32>
    %185 = arith.addf %184, %183 : vector<2x32xf32>
    %186 = arith.divf %184, %185 : vector<2x32xf32>
    %187 = vector.extract_strided_slice %174 {offsets = [0, 64], sizes = [2, 32], strides = [1, 1]} : vector<2x128xf32> to vector<2x32xf32>
    %188 = math.tanh %187 : vector<2x32xf32>
    %189 = vector.extract_strided_slice %174 {offsets = [0, 96], sizes = [2, 32], strides = [1, 1]} : vector<2x128xf32> to vector<2x32xf32>
    %190 = arith.negf %189 : vector<2x32xf32>
    %191 = math.exp %190 : vector<2x32xf32>
    %cst_66 = arith.constant 1.000000e+00 : f32
    %192 = vector.broadcast %cst_66 : f32 to vector<2x32xf32>
    %193 = arith.addf %192, %191 : vector<2x32xf32>
    %194 = arith.divf %192, %193 : vector<2x32xf32>
    %195 = arith.mulf %186, %164 : vector<2x32xf32>
    %196 = arith.mulf %180, %188 : vector<2x32xf32>
    %197 = arith.addf %195, %196 : vector<2x32xf32>
    %198 = math.tanh %197 : vector<2x32xf32>
    %199 = arith.mulf %194, %198 : vector<2x32xf32>
    %c5_67 = arith.constant 5 : index
    %c0_68 = arith.constant 0 : index
    %c0_69 = arith.constant 0 : index
    %200 = vector.load %arg4[%c5_67, %c0_68, %c0_69] : memref<8x2x32xf32, #tpu.memory_space<vmem>>, vector<1x2x32xf32>
    %201 = vector.shape_cast %200 : vector<1x2x32xf32> to vector<2x32xf32>
    %202 = vector.shape_cast %199 : vector<2x32xf32> to vector<1x2x32xf32>
    tpu.vector_store %arg4[%c5_67, %c0_68, %c0_69], %202 {strides = array<i32>} : memref<8x2x32xf32, #tpu.memory_space<vmem>>, vector<1x2x32xf32>,
    %c6 = arith.constant 6 : index
    %c0_70 = arith.constant 0 : index
    %c0_71 = arith.constant 0 : index
    %203 = vector.load %arg2[%c6, %c0_70, %c0_71] : memref<8x2x128xf32, #tpu.memory_space<vmem>>, vector<1x2x128xf32>
    %204 = vector.shape_cast %203 : vector<1x2x128xf32> to vector<2x128xf32>
    %c0_72 = arith.constant 0 : index
    %c0_73 = arith.constant 0 : index
    %205 = vector.load %arg3[%c0_72, %c0_73] : memref<32x128xf32, #tpu.memory_space<vmem>>, vector<32x128xf32>
    %cst_74 = arith.constant dense<0.000000e+00> : vector<2x128xf32>
    %206 = tpu.matmul %199, %205, %cst_74 {dimension_numbers = #tpu.dot_dimension_numbers<[1], [0], [0], [1], [0, 0, 1, 1], [], []>} : vector<2x32xf32>, vector<32x128xf32>, vector<2x128xf32> -> vector<2x128xf32>
    %207 = arith.addf %204, %206 : vector<2x128xf32>
    %208 = vector.extract_strided_slice %207 {offsets = [0, 0], sizes = [2, 32], strides = [1, 1]} : vector<2x128xf32> to vector<2x32xf32>
    %209 = arith.negf %208 : vector<2x32xf32>
    %210 = math.exp %209 : vector<2x32xf32>
    %cst_75 = arith.constant 1.000000e+00 : f32
    %211 = vector.broadcast %cst_75 : f32 to vector<2x32xf32>
    %212 = arith.addf %211, %210 : vector<2x32xf32>
    %213 = arith.divf %211, %212 : vector<2x32xf32>
    %214 = vector.extract_strided_slice %207 {offsets = [0, 32], sizes = [2, 32], strides = [1, 1]} : vector<2x128xf32> to vector<2x32xf32>
    %215 = arith.negf %214 : vector<2x32xf32>
    %216 = math.exp %215 : vector<2x32xf32>
    %cst_76 = arith.constant 1.000000e+00 : f32
    %217 = vector.broadcast %cst_76 : f32 to vector<2x32xf32>
    %218 = arith.addf %217, %216 : vector<2x32xf32>
    %219 = arith.divf %217, %218 : vector<2x32xf32>
    %220 = vector.extract_strided_slice %207 {offsets = [0, 64], sizes = [2, 32], strides = [1, 1]} : vector<2x128xf32> to vector<2x32xf32>
    %221 = math.tanh %220 : vector<2x32xf32>
    %222 = vector.extract_strided_slice %207 {offsets = [0, 96], sizes = [2, 32], strides = [1, 1]} : vector<2x128xf32> to vector<2x32xf32>
    %223 = arith.negf %222 : vector<2x32xf32>
    %224 = math.exp %223 : vector<2x32xf32>
    %cst_77 = arith.constant 1.000000e+00 : f32
    %225 = vector.broadcast %cst_77 : f32 to vector<2x32xf32>
    %226 = arith.addf %225, %224 : vector<2x32xf32>
    %227 = arith.divf %225, %226 : vector<2x32xf32>
    %228 = arith.mulf %219, %197 : vector<2x32xf32>
    %229 = arith.mulf %213, %221 : vector<2x32xf32>
    %230 = arith.addf %228, %229 : vector<2x32xf32>
    %231 = math.tanh %230 : vector<2x32xf32>
    %232 = arith.mulf %227, %231 : vector<2x32xf32>
    %c6_78 = arith.constant 6 : index
    %c0_79 = arith.constant 0 : index
    %c0_80 = arith.constant 0 : index
    %233 = vector.load %arg4[%c6_78, %c0_79, %c0_80] : memref<8x2x32xf32, #tpu.memory_space<vmem>>, vector<1x2x32xf32>
    %234 = vector.shape_cast %233 : vector<1x2x32xf32> to vector<2x32xf32>
    %235 = vector.shape_cast %232 : vector<2x32xf32> to vector<1x2x32xf32>
    tpu.vector_store %arg4[%c6_78, %c0_79, %c0_80], %235 {strides = array<i32>} : memref<8x2x32xf32, #tpu.memory_space<vmem>>, vector<1x2x32xf32>,
    %c7 = arith.constant 7 : index
    %c0_81 = arith.constant 0 : index
    %c0_82 = arith.constant 0 : index
    %236 = vector.load %arg2[%c7, %c0_81, %c0_82] : memref<8x2x128xf32, #tpu.memory_space<vmem>>, vector<1x2x128xf32>
    %237 = vector.shape_cast %236 : vector<1x2x128xf32> to vector<2x128xf32>
    %c0_83 = arith.constant 0 : index
    %c0_84 = arith.constant 0 : index
    %238 = vector.load %arg3[%c0_83, %c0_84] : memref<32x128xf32, #tpu.memory_space<vmem>>, vector<32x128xf32>
    %cst_85 = arith.constant dense<0.000000e+00> : vector<2x128xf32>
    %239 = tpu.matmul %232, %238, %cst_85 {dimension_numbers = #tpu.dot_dimension_numbers<[1], [0], [0], [1], [0, 0, 1, 1], [], []>} : vector<2x32xf32>, vector<32x128xf32>, vector<2x128xf32> -> vector<2x128xf32>
    %240 = arith.addf %237, %239 : vector<2x128xf32>
    %241 = vector.extract_strided_slice %240 {offsets = [0, 0], sizes = [2, 32], strides = [1, 1]} : vector<2x128xf32> to vector<2x32xf32>
    %242 = arith.negf %241 : vector<2x32xf32>
    %243 = math.exp %242 : vector<2x32xf32>
    %cst_86 = arith.constant 1.000000e+00 : f32
    %244 = vector.broadcast %cst_86 : f32 to vector<2x32xf32>
    %245 = arith.addf %244, %243 : vector<2x32xf32>
    %246 = arith.divf %244, %245 : vector<2x32xf32>
    %247 = vector.extract_strided_slice %240 {offsets = [0, 32], sizes = [2, 32], strides = [1, 1]} : vector<2x128xf32> to vector<2x32xf32>
    %248 = arith.negf %247 : vector<2x32xf32>
    %249 = math.exp %248 : vector<2x32xf32>
    %cst_87 = arith.constant 1.000000e+00 : f32
    %250 = vector.broadcast %cst_87 : f32 to vector<2x32xf32>
    %251 = arith.addf %250, %249 : vector<2x32xf32>
    %252 = arith.divf %250, %251 : vector<2x32xf32>
    %253 = vector.extract_strided_slice %240 {offsets = [0, 64], sizes = [2, 32], strides = [1, 1]} : vector<2x128xf32> to vector<2x32xf32>
    %254 = math.tanh %253 : vector<2x32xf32>
    %255 = vector.extract_strided_slice %240 {offsets = [0, 96], sizes = [2, 32], strides = [1, 1]} : vector<2x128xf32> to vector<2x32xf32>
    %256 = arith.negf %255 : vector<2x32xf32>
    %257 = math.exp %256 : vector<2x32xf32>
    %cst_88 = arith.constant 1.000000e+00 : f32
    %258 = vector.broadcast %cst_88 : f32 to vector<2x32xf32>
    %259 = arith.addf %258, %257 : vector<2x32xf32>
    %260 = arith.divf %258, %259 : vector<2x32xf32>
    %261 = arith.mulf %252, %230 : vector<2x32xf32>
    %262 = arith.mulf %246, %254 : vector<2x32xf32>
    %263 = arith.addf %261, %262 : vector<2x32xf32>
    %264 = math.tanh %263 : vector<2x32xf32>
    %265 = arith.mulf %260, %264 : vector<2x32xf32>
    %c7_89 = arith.constant 7 : index
    %c0_90 = arith.constant 0 : index
    %c0_91 = arith.constant 0 : index
    %266 = vector.load %arg4[%c7_89, %c0_90, %c0_91] : memref<8x2x32xf32, #tpu.memory_space<vmem>>, vector<1x2x32xf32>
    %267 = vector.shape_cast %266 : vector<1x2x32xf32> to vector<2x32xf32>
    %268 = vector.shape_cast %265 : vector<2x32xf32> to vector<1x2x32xf32>
    tpu.vector_store %arg4[%c7_89, %c0_90, %c0_91], %268 {strides = array<i32>} : memref<8x2x32xf32, #tpu.memory_space<vmem>>, vector<1x2x32xf32>,
    %c0_92 = arith.constant 0 : index
    %c0_93 = arith.constant 0 : index
    %269 = vector.load %arg6[%c0_92, %c0_93] : memref<2x32xf32, #tpu.memory_space<vmem>>, vector<2x32xf32>
    tpu.vector_store %arg6[%c0_92, %c0_93], %265 {strides = array<i32>} : memref<2x32xf32, #tpu.memory_space<vmem>>, vector<2x32xf32>,
    %c0_94 = arith.constant 0 : index
    %c0_95 = arith.constant 0 : index
    %270 = vector.load %arg7[%c0_94, %c0_95] : memref<2x32xf32, #tpu.memory_space<vmem>>, vector<2x32xf32>
    tpu.vector_store %arg7[%c0_94, %c0_95], %263 {strides = array<i32>} : memref<2x32xf32, #tpu.memory_space<vmem>>, vector<2x32xf32>,
    %c0_i32_96 = arith.constant 0 : i32
    %271 = arith.cmpi eq, %arg1, %c0_i32_96 : i32
    %272 = arith.extui %271 : i1 to i32
    %c0_i32_97 = arith.constant 0 : i32
    %273 = arith.cmpi ne, %272, %c0_i32_97 : i32
    scf.if %273 {
      %c0_98 = arith.constant 0 : index
      %c0_99 = arith.constant 0 : index
      %274 = vector.load %arg5[%c0_98, %c0_99] : memref<2x32xf32, #tpu.memory_space<vmem>>, vector<2x32xf32>
      tpu.vector_store %arg5[%c0_98, %c0_99], %263 {strides = array<i32>} : memref<2x32xf32, #tpu.memory_space<vmem>>, vector<2x32xf32>,
    } else {
    }
    return
  }
  func.func @transform_0(%arg0: i32, %arg1: i32) -> (i32, i32, i32) {
    %c0_i32 = arith.constant 0 : i32
    %c0_i32_0 = arith.constant 0 : i32
    return %arg1, %arg0, %c0_i32 : i32, i32, i32
  }
  func.func @transform_1(%arg0: i32, %arg1: i32) -> (i32, i32) {
    %c0_i32 = arith.constant 0 : i32
    %c0_i32_0 = arith.constant 0 : i32
    %c0_i32_1 = arith.constant 0 : i32
    return %c0_i32, %c0_i32_0 : i32, i32
  }
  func.func @transform_2(%arg0: i32, %arg1: i32) -> (i32, i32, i32) {
    %c0_i32 = arith.constant 0 : i32
    %c0_i32_0 = arith.constant 0 : i32
    return %arg1, %arg0, %c0_i32 : i32, i32, i32
  }
  func.func @transform_3(%arg0: i32, %arg1: i32) -> (i32, i32) {
    %c0_i32 = arith.constant 0 : i32
    %c0_i32_0 = arith.constant 0 : i32
    return %arg0, %c0_i32 : i32, i32
  }
}

</mosaic_0001>

<bundles_post_ra>
// kernel: encoder_forward.1
= control target key start
LH: loop header
LB: loop body
LE: loop exit
PB: predicated region body
PF: predicated region fallthrough
CT: control target
= control target key end

     0   :  { %v1229_v3 = vmov 0.0|0.0   ;;  %vm1230_vm0 = vmmov 0   ;;  %v1231_v6 = vmov 0.0   ;;  %vm18_vm1 = vcmask 254976   ;;  %s1436_s0 = inlined_call_operand.vmem [shape: f32[8,2,128], index: 0, kind: input, shape index: {}]   ;;  %s1437_s1 = inlined_call_operand.vmem [shape: f32[32,128], index: 1, kind: input, shape index: {}]   ;;  %s1438_s2 = inlined_call_operand.vmem [shape: f32[8,2,32], index: 2, kind: output, shape index: {0}]   ;;  %s1439_s3 = inlined_call_operand.hbm [shape: f32[2,32], index: 3, kind: output, shape index: {1}]  }
   0x1   :  { %v24_v0 = vld [vmem:[%s1437_s1] sm:$0xff]  ;;  %v25_v1 = vld [vmem:[%s1437_s1 + $0x8] sm:$0xff]  ;;  %v26_v2 = vld [vmem:[%s1437_s1 + $0x10] sm:$0xff]  ;;  %1086 = vmatprep.subr.bf16.mxu0 %v1229_v3  ;;  %1006 = vmatprep.mubr.msk.f32.mxu0 %vm1230_vm0, %v1231_v6  ;;  %19 = vst.msk [vmem:[#allocation2] sm:$0x3] %vm18_vm1, %v1231_v6 }
   0x2   :  { %v1266_v4 = vpack.c.bf16 %v25_v1, %v24_v0  ;;  %v27_v5 = vld [vmem:[%s1437_s1 + $0x18] sm:$0xff]  ;;  %20 = vst.msk [vmem:[#allocation3] sm:$0x3] %vm18_vm1, %v1231_v6  ;;  %1092 = vmatprep.subr.bf16.mxu1 %v1229_v3  ;;  %1017 = vmatprep.mubr.msk.f32.mxu1 %vm1230_vm0, %v1231_v6 }
   0x3   :  { %9 = vsyncpa [#allocation5], 0  ;;  %v1281_v7 = vpack.c.bf16 %v27_v5, %v26_v2  ;;  %vm28_vm2 = vcmask 261120   ;;  %v23_v9 = vld [vmem:[%s1436_s0] sm:$0x3]  ;;  %s1232_s21 = smov 64  }
   0x4   :  { %1088 = vmatpush3.bf16.msra.mxu0 %v1266_v4  ;;  %1094 = vmatpush3.bf16.msra.mxu1 %v1266_v4  ;;  %s1233_s22 = smov 32   ;;  %v930_v29 = vld [vmem:[%s1436_s0 + $0x2] sm:$0x3]  ;;  %v934_v47 = vld [vmem:[%s1436_s0 + $0x4] sm:$0x3]  ;;  %s1235_s25 = smov [#allocation4]  }
   0x5   :  { %1089 = vmatprep.subr.bf16.mxu0 %v1229_v3  ;;  %1095 = vmatprep.subr.bf16.mxu1 %v1229_v3  ;;  %v938_v1 = vld [vmem:[%s1436_s0 + $0x6] sm:$0x3]  ;;  %s918_s26 = sshll.u32 %s1235_s25, 4  ;;  %s919_s26 = int_to_ptr.vmem [resolvable:$true] %s918_s26 }
   0x6   :  { %s1205_s27 = scalar_lea.vmem %s919_s26, 32  ;;  %p1210_p1 = scmp.lt.s32.totalorder %s919_s26, %s919_s26 }
   0x7   :  { %p1206_p0 = scmp.ne.s32.totalorder %s919_s26, %s1205_s27  ;;  %p1211_p2 = scmp.lt.s32.totalorder %s1205_s27, %s1205_s27 }
   0x8   :  { %1091 = vmatpush3.bf16.msra.mxu0 %v1281_v7  ;;  %1097 = vmatpush3.bf16.msra.mxu1 %v1281_v7  ;;  %v21_v8 = vld [vmem:[#allocation2] sm:$0x3] }
   0x9   :  { %1098 = vmatprep.subr.bf16.mxu0 %v1229_v3  ;;  %1104 = vmatprep.subr.bf16.mxu1 %v1229_v3  ;;  %v22_v14 = vld [vmem:[#allocation3] sm:$0x3]  ;;  %p1212_p3 = por %p1211_p2, %p1210_p1 }
   0xb   :  { %1007 = vmatmul.mubr.msk.f32.vlgmr.msra.gmra.mrb[0].mxu0 %vm28_vm2, %v21_v8  ;;  %p1213_p4 = pnand %p1212_p3, %p1206_p0 }
   0xc   :  { %1100 = vmatpush3.bf16.msra.mxu0 %v1266_v4  ;;  %1028 = vmatprep.mubr.msk.f32.mxu0 %vm1230_vm0, %v1231_v6 }
   0xd   :  { %1101 = vmatprep.subr.bf16.mxu0 %v1229_v3 }
  0x10   :  { %1103 = vmatpush3.bf16.msra.mxu0 %v1281_v7 }
  0x11   :  { %1110 = vmatprep.subr.bf16.mxu0 %v1229_v3 }
  0xde   :  { %v98_v10 = vpop.f32.mrb[0].mxu0 }
  0xdf   :  { %v102_v11 = vadd.f32 %v98_v10, %v23_v9  ;;  %v1008_v12 = vpop.f32.mrb[1].mxu0 }
  0xe1   :  { %1141 = vtanh.f32 %v102_v11  ;;  %v929_v15 = vmul.f32 -1.442695, %v102_v11 }
  0xe3   :  { %1143 = vpow2.f32 %v929_v15 }
  0xeb   :  { %v1142_v13 = vpop.eup %1141 }
  0xec   :  { %116 = vrot.lane.b32.xlu0 %v1142_v13, %s1232_s21 }
  0xed   :  { %v1144_v16 = vpop.eup %1143 }
  0xee   :  { %v106_v17 = vadd.f32 1.0, %v1144_v16 }
  0xf0   :  { %111 = vrot.lane.b32.xlu0 %v22_v14, %s1233_s22  ;;  %1145 = vrcp.f32 %v106_v17 }
  0xfa   :  { %v1146_v18 = vpop.eup %1145 }
 0x15e   :  { %v117_v19 = vpop.permute.xlu0 %116 }
 0x15f   :  { %v119_v20 = vmul.f32 %v1146_v18, %v117_v19 }
 0x161   :  { %121 = vrot.lane.b32.xlu1 %v119_v20, %s1233_s22 }
 0x162   :  { %v112_v21 = vpop.permute.xlu0 %111 }
 0x163   :  { %v114_v22 = vmul.f32 %v1146_v18, %v112_v21 }
 0x1d3   :  { %v122_v23 = vpop.permute.xlu1 %121 }
 0x1d4   :  { %v124_v24 = vadd.f32 %v122_v23, %v114_v22  ;;  %v942_v23 = vld [vmem:[%s1436_s0 + $0x8] sm:$0x3] }
 0x1d6   :  { %1147 = vtanh.f32 %v124_v24 }
 0x1e0   :  { %v1148_v25 = vpop.eup %1147 }
 0x1e1   :  { %127 = vrot.lane.b32.xlu1 %v1148_v25, %s1232_s21 }
 0x253   :  { %v128_v26 = vpop.permute.xlu1 %127 }
 0x254   :  { %v130_v27 = vmul.f32 %v1146_v18, %v128_v26 }
 0x256   :  { %132 = vrot.lane.b32.xlu0 %v130_v27, %s1233_s22 }
 0x2c8   :  { %v133_v28 = vpop.permute.xlu0 %132 }
 0x2c9   :  { %136 = vst.msk [vmem:[%s1438_s2] sm:$0x3] %vm18_vm1, %v133_v28  ;;  %1018 = vmatmul.mubr.msk.f32.vlgmr.msra.gmra.mrb[0].mxu1 %vm28_vm2, %v133_v28 }
 0x2ca   :  { %1106 = vmatpush3.bf16.msra.mxu1 %v1266_v4  ;;  %1039 = vmatprep.mubr.msk.f32.mxu1 %vm1230_vm0, %v1231_v6 }
 0x2cb   :  { %1107 = vmatprep.subr.bf16.mxu1 %v1229_v3 }
 0x2ce   :  { %1109 = vmatpush3.bf16.msra.mxu1 %v1281_v7 }
 0x2cf   :  { %1116 = vmatprep.subr.bf16.mxu1 %v1229_v3 }
 0x39c   :  { %v211_v30 = vpop.f32.mrb[0].mxu1 }
 0x39d   :  { %v215_v31 = vadd.f32 %v930_v29, %v211_v30  ;;  %v1019_v32 = vpop.f32.mrb[1].mxu1 }
 0x39f   :  { %1149 = vtanh.f32 %v215_v31  ;;  %v932_v34 = vmul.f32 -1.442695, %v215_v31 }
 0x3a1   :  { %1151 = vpow2.f32 %v932_v34 }
 0x3a9   :  { %v1150_v33 = vpop.eup %1149 }
 0x3aa   :  { %225 = vrot.lane.b32.xlu1 %v1150_v33, %s1232_s21 }
 0x3ab   :  { %v1152_v35 = vpop.eup %1151 }
 0x3ac   :  { %v219_v36 = vadd.f32 1.0, %v1152_v35 }
 0x3ae   :  { %1153 = vrcp.f32 %v219_v36 }
 0x3b8   :  { %v1154_v37 = vpop.eup %1153 }
 0x3b9   :  { %v223_v40 = vmul.f32 %v1154_v37, %v124_v24 }
 0x41c   :  { %v226_v38 = vpop.permute.xlu1 %225 }
 0x41d   :  { %v228_v39 = vmul.f32 %v1154_v37, %v226_v38 }
 0x41f   :  { %230 = vrot.lane.b32.xlu0 %v228_v39, %s1233_s22 }
 0x491   :  { %v231_v41 = vpop.permute.xlu0 %230 }
 0x492   :  { %v233_v42 = vadd.f32 %v231_v41, %v223_v40  ;;  %v946_v41 = vld [vmem:[%s1436_s0 + $0xa] sm:$0x3] }
 0x494   :  { %1155 = vtanh.f32 %v233_v42 }
 0x49e   :  { %v1156_v43 = vpop.eup %1155 }
 0x49f   :  { %236 = vrot.lane.b32.xlu1 %v1156_v43, %s1232_s21 }
 0x511   :  { %v237_v44 = vpop.permute.xlu1 %236 }
 0x512   :  { %v239_v45 = vmul.f32 %v1154_v37, %v237_v44 }
 0x514   :  { %241 = vrot.lane.b32.xlu0 %v239_v45, %s1233_s22 }
 0x586   :  { %v242_v46 = vpop.permute.xlu0 %241 }
 0x587   :  { %933 = vst.msk [vmem:[%s1438_s2 + $0x2] sm:$0x3] %vm18_vm1, %v242_v46  ;;  %1029 = vmatmul.mubr.msk.f32.vlgmr.msra.gmra.mrb[2].mxu0 %vm28_vm2, %v242_v46 }
 0x588   :  { %1112 = vmatpush3.bf16.msra.mxu0 %v1266_v4  ;;  %1050 = vmatprep.mubr.msk.f32.mxu0 %vm1230_vm0, %v1231_v6 }
 0x589   :  { %1113 = vmatprep.subr.bf16.mxu0 %v1229_v3 }
 0x58c   :  { %1115 = vmatpush3.bf16.msra.mxu0 %v1281_v7 }
 0x58d   :  { %1122 = vmatprep.subr.bf16.mxu0 %v1229_v3 }
 0x65a   :  { %v320_v48 = vpop.f32.mrb[2].mxu0 }
 0x65b   :  { %v324_v49 = vadd.f32 %v934_v47, %v320_v48  ;;  %v1030_v50 = vpop.f32.mrb[3].mxu0 }
 0x65d   :  { %1157 = vtanh.f32 %v324_v49  ;;  %v936_v52 = vmul.f32 -1.442695, %v324_v49 }
 0x65f   :  { %1159 = vpow2.f32 %v936_v52 }
 0x667   :  { %v1158_v51 = vpop.eup %1157 }
 0x668   :  { %334 = vrot.lane.b32.xlu1 %v1158_v51, %s1232_s21 }
 0x669   :  { %v1160_v53 = vpop.eup %1159 }
 0x66a   :  { %v328_v54 = vadd.f32 1.0, %v1160_v53 }
 0x66c   :  { %1161 = vrcp.f32 %v328_v54 }
 0x676   :  { %v1162_v55 = vpop.eup %1161 }
 0x677   :  { %v332_v58 = vmul.f32 %v1162_v55, %v233_v42 }
 0x6da   :  { %v335_v56 = vpop.permute.xlu1 %334 }
 0x6db   :  { %v337_v57 = vmul.f32 %v1162_v55, %v335_v56 }
 0x6dd   :  { %339 = vrot.lane.b32.xlu0 %v337_v57, %s1233_s22 }
 0x74f   :  { %v340_v59 = vpop.permute.xlu0 %339 }
 0x750   :  { %v342_v60 = vadd.f32 %v340_v59, %v332_v58 }
 0x752   :  { %1163 = vtanh.f32 %v342_v60 }
 0x75c   :  { %v1164_v61 = vpop.eup %1163 }
 0x75d   :  { %345 = vrot.lane.b32.xlu1 %v1164_v61, %s1232_s21 }
 0x7cf   :  { %v346_v62 = vpop.permute.xlu1 %345 }
 0x7d0   :  { %v348_v63 = vmul.f32 %v1162_v55, %v346_v62  ;;  %v950_v55 = vld [vmem:[%s1436_s0 + $0xc] sm:$0x3] }
 0x7d2   :  { %350 = vrot.lane.b32.xlu0 %v348_v63, %s1233_s22 }
 0x844   :  { %v351_v0 = vpop.permute.xlu0 %350 }
 0x845   :  { %937 = vst.msk [vmem:[%s1438_s2 + $0x4] sm:$0x3] %vm18_vm1, %v351_v0  ;;  %1040 = vmatmul.mubr.msk.f32.vlgmr.msra.gmra.mrb[2].mxu1 %vm28_vm2, %v351_v0 }
 0x846   :  { %1118 = vmatpush3.bf16.msra.mxu1 %v1266_v4  ;;  %1061 = vmatprep.mubr.msk.f32.mxu1 %vm1230_vm0, %v1231_v6 }
 0x847   :  { %1119 = vmatprep.subr.bf16.mxu1 %v1229_v3 }
 0x84a   :  { %1121 = vmatpush3.bf16.msra.mxu1 %v1281_v7 }
 0x84b   :  { %1128 = vmatprep.subr.bf16.mxu1 %v1229_v3 }
 0x918   :  { %v429_v2 = vpop.f32.mrb[2].mxu1 }
 0x919   :  { %v433_v5 = vadd.f32 %v938_v1, %v429_v2  ;;  %v1041_v8 = vpop.f32.mrb[3].mxu1 }
 0x91b   :  { %1165 = vtanh.f32 %v433_v5  ;;  %v940_v10 = vmul.f32 -1.442695, %v433_v5 }
 0x91d   :  { %1167 = vpow2.f32 %v940_v10 }
 0x925   :  { %v1166_v9 = vpop.eup %1165 }
 0x926   :  { %443 = vrot.lane.b32.xlu1 %v1166_v9, %s1232_s21 }
 0x927   :  { %v1168_v11 = vpop.eup %1167 }
 0x928   :  { %v437_v12 = vadd.f32 1.0, %v1168_v11 }
 0x92a   :  { %1169 = vrcp.f32 %v437_v12 }
 0x934   :  { %v1170_v13 = vpop.eup %1169 }
 0x935   :  { %v441_v16 = vmul.f32 %v1170_v13, %v342_v60 }
 0x998   :  { %v444_v14 = vpop.permute.xlu1 %443 }
 0x999   :  { %v446_v15 = vmul.f32 %v1170_v13, %v444_v14 }
 0x99b   :  { %448 = vrot.lane.b32.xlu0 %v446_v15, %s1233_s22 }
 0xa0d   :  { %v449_v17 = vpop.permute.xlu0 %448 }
 0xa0e   :  { %v451_v18 = vadd.f32 %v449_v17, %v441_v16 }
 0xa10   :  { %1171 = vtanh.f32 %v451_v18 }
 0xa1a   :  { %v1172_v19 = vpop.eup %1171 }
 0xa1b   :  { %454 = vrot.lane.b32.xlu1 %v1172_v19, %s1232_s21 }
 0xa8d   :  { %v455_v20 = vpop.permute.xlu1 %454 }
 0xa8e   :  { %v457_v21 = vmul.f32 %v1170_v13, %v455_v20  ;;  %v954_v13 = vld [vmem:[%s1436_s0 + $0xe] sm:$0x3]  ;;  %s1234_s0 = smov 96  }
 0xa90   :  { %459 = vrot.lane.b32.xlu0 %v457_v21, %s1233_s22 }
 0xb02   :  { %v460_v22 = vpop.permute.xlu0 %459 }
 0xb03   :  { %941 = vst.msk [vmem:[%s1438_s2 + $0x6] sm:$0x3] %vm18_vm1, %v460_v22  ;;  %1051 = vmatmul.mubr.msk.f32.vlgmr.msra.gmra.mrb[4].mxu0 %vm28_vm2, %v460_v22 }
 0xb04   :  { %1124 = vmatpush3.bf16.msra.mxu0 %v1266_v4  ;;  %1072 = vmatprep.mubr.msk.f32.mxu0 %vm1230_vm0, %v1231_v6 }
 0xb05   :  { %1125 = vmatprep.subr.bf16.mxu0 %v1229_v3 }
 0xb08   :  { %1127 = vmatpush3.bf16.msra.mxu0 %v1281_v7 }
 0xbd6   :  { %v538_v24 = vpop.f32.mrb[4].mxu0 }
 0xbd7   :  { %v542_v25 = vadd.f32 %v942_v23, %v538_v24  ;;  %v1052_v26 = vpop.f32.mrb[5].mxu0 }
 0xbd9   :  { %1173 = vtanh.f32 %v542_v25  ;;  %v944_v28 = vmul.f32 -1.442695, %v542_v25 }
 0xbdb   :  { %1175 = vpow2.f32 %v944_v28 }
 0xbe3   :  { %v1174_v27 = vpop.eup %1173 }
 0xbe4   :  { %552 = vrot.lane.b32.xlu1 %v1174_v27, %s1232_s21 }
 0xbe5   :  { %v1176_v29 = vpop.eup %1175 }
 0xbe6   :  { %v546_v30 = vadd.f32 1.0, %v1176_v29 }
 0xbe8   :  { %1177 = vrcp.f32 %v546_v30 }
 0xbf2   :  { %v1178_v31 = vpop.eup %1177 }
 0xbf3   :  { %v550_v34 = vmul.f32 %v1178_v31, %v451_v18 }
 0xc56   :  { %v553_v32 = vpop.permute.xlu1 %552 }
 0xc57   :  { %v555_v33 = vmul.f32 %v1178_v31, %v553_v32 }
 0xc59   :  { %557 = vrot.lane.b32.xlu0 %v555_v33, %s1233_s22 }
 0xccb   :  { %v558_v35 = vpop.permute.xlu0 %557 }
 0xccc   :  { %v560_v36 = vadd.f32 %v558_v35, %v550_v34 }
 0xcce   :  { %1179 = vtanh.f32 %v560_v36 }
 0xcd8   :  { %v1180_v37 = vpop.eup %1179 }
 0xcd9   :  { %563 = vrot.lane.b32.xlu1 %v1180_v37, %s1232_s21 }
 0xd4b   :  { %v564_v38 = vpop.permute.xlu1 %563 }
 0xd4c   :  { %v566_v39 = vmul.f32 %v1178_v31, %v564_v38 }
 0xd4e   :  { %568 = vrot.lane.b32.xlu0 %v566_v39, %s1233_s22 }
 0xdc0   :  { %v569_v40 = vpop.permute.xlu0 %568 }
 0xdc1   :  { %945 = vst.msk [vmem:[%s1438_s2 + $0x8] sm:$0x3] %vm18_vm1, %v569_v40  ;;  %1062 = vmatmul.mubr.msk.f32.vlgmr.msra.gmra.mrb[4].mxu1 %vm28_vm2, %v569_v40 }
 0xdc2   :  { %1130 = vmatpush3.bf16.msra.mxu1 %v1266_v4  ;;  %1083 = vmatprep.mubr.msk.f32.mxu1 %vm1230_vm0, %v1231_v6 }
 0xdc3   :  { %1131 = vmatprep.subr.bf16.mxu1 %v1229_v3 }
 0xdc6   :  { %1133 = vmatpush3.bf16.msra.mxu1 %v1281_v7 }
 0xe94   :  { %v647_v42 = vpop.f32.mrb[4].mxu1 }
 0xe95   :  { %v651_v43 = vadd.f32 %v946_v41, %v647_v42  ;;  %v1063_v44 = vpop.f32.mrb[5].mxu1 }
 0xe97   :  { %1181 = vtanh.f32 %v651_v43  ;;  %v948_v46 = vmul.f32 -1.442695, %v651_v43 }
 0xe99   :  { %1183 = vpow2.f32 %v948_v46 }
 0xea1   :  { %v1182_v45 = vpop.eup %1181 }
 0xea2   :  { %661 = vrot.lane.b32.xlu1 %v1182_v45, %s1232_s21 }
 0xea3   :  { %v1184_v4 = vpop.eup %1183 }
 0xea4   :  { %v655_v47 = vadd.f32 1.0, %v1184_v4 }
 0xea6   :  { %1185 = vrcp.f32 %v655_v47 }
 0xeb0   :  { %v1186_v6 = vpop.eup %1185 }
 0xeb1   :  { %v659_v7 = vmul.f32 %v1186_v6, %v560_v36 }
 0xf14   :  { %v662_v3 = vpop.permute.xlu1 %661 }
 0xf15   :  { %v664_v48 = vmul.f32 %v1186_v6, %v662_v3 }
 0xf17   :  { %666 = vrot.lane.b32.xlu0 %v664_v48, %s1233_s22 }
 0xf89   :  { %v667_v49 = vpop.permute.xlu0 %666 }
 0xf8a   :  { %v669_v50 = vadd.f32 %v667_v49, %v659_v7 }
 0xf8c   :  { %1187 = vtanh.f32 %v669_v50 }
 0xf96   :  { %v1188_v51 = vpop.eup %1187 }
 0xf97   :  { %672 = vrot.lane.b32.xlu1 %v1188_v51, %s1232_s21 }
0x1009   :  { %v673_v52 = vpop.permute.xlu1 %672 }
0x100a   :  { %v675_v53 = vmul.f32 %v1186_v6, %v673_v52 }
0x100c   :  { %677 = vrot.lane.b32.xlu0 %v675_v53, %s1233_s22 }
0x107e   :  { %v678_v54 = vpop.permute.xlu0 %677 }
0x107f   :  { %949 = vst.msk [vmem:[%s1438_s2 + $0xa] sm:$0x3] %vm18_vm1, %v678_v54  ;;  %1073 = vmatmul.mubr.msk.f32.vlgmr.msra.gmra.mrb[6].mxu0 %vm28_vm2, %v678_v54 }
0x1152   :  { %v756_v56 = vpop.f32.mrb[6].mxu0 }
0x1153   :  { %v760_v57 = vadd.f32 %v950_v55, %v756_v56  ;;  %v1074_v58 = vpop.f32.mrb[7].mxu0 }
0x1155   :  { %1189 = vtanh.f32 %v760_v57  ;;  %v952_v60 = vmul.f32 -1.442695, %v760_v57 }
0x1157   :  { %1191 = vpow2.f32 %v952_v60 }
0x115f   :  { %v1190_v59 = vpop.eup %1189 }
0x1160   :  { %770 = vrot.lane.b32.xlu1 %v1190_v59, %s1232_s21 }
0x1161   :  { %v1192_v61 = vpop.eup %1191 }
0x1162   :  { %v764_v62 = vadd.f32 1.0, %v1192_v61 }
0x1164   :  { %1193 = vrcp.f32 %v764_v62 }
0x116e   :  { %v1194_v63 = vpop.eup %1193 }
0x116f   :  { %v768_v2 = vmul.f32 %v1194_v63, %v669_v50 }
0x11d2   :  { %v771_v0 = vpop.permute.xlu1 %770 }
0x11d3   :  { %v773_v1 = vmul.f32 %v1194_v63, %v771_v0 }
0x11d5   :  { %775 = vrot.lane.b32.xlu0 %v773_v1, %s1233_s22 }
0x1247   :  { %v776_v5 = vpop.permute.xlu0 %775 }
0x1248   :  { %v778_v8 = vadd.f32 %v776_v5, %v768_v2 }
0x124a   :  { %1195 = vtanh.f32 %v778_v8 }
0x1254   :  { %v1196_v9 = vpop.eup %1195 }
0x1255   :  { %781 = vrot.lane.b32.xlu1 %v1196_v9, %s1232_s21 }
0x12c7   :  { %v782_v10 = vpop.permute.xlu1 %781 }
0x12c8   :  { %v784_v11 = vmul.f32 %v1194_v63, %v782_v10 }
0x12ca   :  { %786 = vrot.lane.b32.xlu0 %v784_v11, %s1233_s22 }
0x133c   :  { %v787_v12 = vpop.permute.xlu0 %786 }
0x133d   :  { %953 = vst.msk [vmem:[%s1438_s2 + $0xc] sm:$0x3] %vm18_vm1, %v787_v12  ;;  %1084 = vmatmul.mubr.msk.f32.vlgmr.msra.gmra.mrb[6].mxu1 %vm28_vm2, %v787_v12 }
0x1410   :  { %v865_v14 = vpop.f32.mrb[6].mxu1 }
0x1411   :  { %v869_v15 = vadd.f32 %v954_v13, %v865_v14  ;;  %v1085_v16 = vpop.f32.mrb[7].mxu1 }
0x1413   :  { %1197 = vtanh.f32 %v869_v15  ;;  %v956_v18 = vmul.f32 -1.442695, %v869_v15 }
0x1415   :  { %1199 = vpow2.f32 %v956_v18 }
0x141d   :  { %v1198_v17 = vpop.eup %1197 }
0x141e   :  { %879 = vrot.lane.b32.xlu1 %v1198_v17, %s1232_s21 }
0x141f   :  { %v1200_v19 = vpop.eup %1199 }
0x1420   :  { %v873_v20 = vadd.f32 1.0, %v1200_v19 }
0x1422   :  { %1201 = vrcp.f32 %v873_v20 }
0x142c   :  { %v1202_v21 = vpop.eup %1201 }
0x142d   :  { %v877_v24 = vmul.f32 %v1202_v21, %v778_v8 }
0x1490   :  { %v880_v22 = vpop.permute.xlu1 %879 }
0x1491   :  { %v882_v23 = vmul.f32 %v1202_v21, %v880_v22 }
0x1493   :  { %884 = vrot.lane.b32.xlu0 %v882_v23, %s1233_s22 }
0x1505   :  { %v885_v25 = vpop.permute.xlu0 %884 }
0x1506   :  { %v887_v26 = vadd.f32 %v885_v25, %v877_v24 }
0x1508   :  { %1203 = vtanh.f32 %v887_v26  ;;  %902 = vrot.lane.b32.xlu0 %v887_v26, %s1234_s0 }
0x1512   :  { %v1204_v27 = vpop.eup %1203 }
0x1513   :  { %890 = vrot.lane.b32.xlu1 %v1204_v27, %s1232_s21 }
0x157a   :  { %v903_v28 = vpop.permute.xlu0 %902 }
0x157b   :  { %905 = vst.msk [vmem:[#allocation3] sm:$0x3] %vm18_vm1, %v903_v28  ;;  %909 = vst.msk [vmem:[#allocation4] sm:$0x3] %vm18_vm1, %v903_v28 }
0x157c   :  { %1216 = shalt.err (!%p1213_p4)
}
0x157d   :  { %s1217_s30 = scalar_lea.hbm %s1439_s3, 32 }
0x157e   :  { %p1218_p5 = scmp.ne.s32.totalorder %s1439_s3, %s1217_s30  ;;  %p1221_p6 = scmp.lt.u32.totalorder %s1217_s30, %s1439_s3 }
0x1580   :  { %p1223_p7 = pnand %p1221_p6, %p1218_p5 }
0x1582   :  { %1226 = shalt.err (!%p1223_p7)
}
0x1583   :  { %921 = dma.vmem_to_hbm [thread:$0]  %s919_s26, 32, %s1439_s3, [#allocation5]  }
0x1585   :  { %v891_v29 = vpop.permute.xlu1 %890 }
0x1586   :  { %v893_v30 = vmul.f32 %v1202_v21, %v891_v29 }
0x1588   :  { %895 = vrot.lane.b32.xlu1 %v893_v30, %s1233_s22 }
0x15fa   :  { %v896_v31 = vpop.permute.xlu1 %895 }
0x15fb   :  { %957 = vst.msk [vmem:[%s1438_s2 + $0xe] sm:$0x3] %vm18_vm1, %v896_v31  ;;  %900 = vst.msk [vmem:[#allocation2] sm:$0x3] %vm18_vm1, %v896_v31 }
0x15fc   :  { %1227 = dma.done.wait [#allocation5], 32  }
0x15fd   :  { %1228 = vsyncadd [#allocation5], 4294967264 }
0x15fe   :  { %927 = vsyncpa [#allocation5], 1 }

</bundles_post_ra>
